<compile_context>
chip_gen: v6e
topology: v6e:2x2x1
jax: 0.10.0
libtpu: 0.0.40
codegen_flags: <defaults>
</compile_context>

<pallas_src>
import jax
import jax.numpy as jnp
import numpy as np
from jax.experimental import pallas as pl
from jax.experimental.pallas import tpu as pltpu

# ----------------------------- model dims ---------------------------------
B = 2            # batch
C_IN = 4         # image channels
H = W = 16       # image spatial
KH = KW = 3      # conv kernel
C_CONV = 8       # conv output channels
D_IMG = 32       # rgb_encoder output feature dim
L = 8            # question sequence length
E_TXT = 32       # question token embedding dim
D_TXT = 32       # text_encoder output feature dim
D_LIDAR = 16     # lidar feature dim
D_CAT = D_IMG + D_TXT + D_LIDAR   # 80
D_HID = 64       # predictor hidden
N_ANS = 10       # answer logits

HW = H * W                      # 256
KDIM = KH * KW * C_IN           # 36 (im2col patch length, used by reference)
PH, PW = H + 2, W + 2           # padded spatial
IMG_LANES = PW * C_IN           # 72   (padded row, (col, chan) flattened to lanes)
CONV_LANES = W * C_CONV         # 128  (conv output row, (col, chan) on lanes)
D_ENC = D_IMG + D_TXT           # 64
BH = B * H                      # 32   (batched conv M)
ACT_ROWS = L + 1                # question tokens + 1 aux row (mask | lidar | pad)

# --------------------- packed parameter buffer layout ----------------------
# Rows 0..215        : KH lane-banded conv weights, (72, 128) each, full width.
# Rows 216..343 (128): shared-row block
#     lanes   0.. 31 : w_img_eff (128, 32)   (1/HW folded in)
#     lanes  32.. 95 : w1        ( 80, 64)   rows [img(32) | txt(32) | lidar(16)]
#     lanes  96..127 : w_txt     ( 32, 32)   rows 216..247
#     lanes  96..105 : w2        ( 64, 10)   rows 248..311
# Rows 344..351      : biases
#     row 344        : conv bias tiled over (col, chan) lanes (128)
#     row 345        : [b_img(0:32) | b_txt(32:64) | b1(64:128)]
#     row 346        : b2 (0:10)
R_WC = 0
R_ENC = R_WC + KH * IMG_LANES        # 216
L_WIMG = 0
L_W1 = 32
L_WTXT = 96
R_W2 = R_ENC + E_TXT                 # 248
L_W2 = 96
R_BIAS = R_ENC + CONV_LANES          # 344
PACK_ROWS = R_BIAS + 8               # 352
PACK_COLS = 128


# ------------------------------ kernel -------------------------------------
def _baseline_kernel(
    taps_ref,    # (KH, B*H, IMG_LANES)   conv taps: row h of batch b at sublane b*H+h
    act_ref,     # (B, L+1, E_TXT)        [question tokens ; mask|lidar|pad row]
    pp_ref,      # (PACK_ROWS, 128)       packed weights/biases (single DMA)
    out_ref,     # (B, N_ANS)
):
    f32 = jnp.float32

    # ---- rgb_encoder: 3x3 conv as 3 batched lane-banded matmuls (M=B*H=32),
    #      + bias, ReLU, global sum-pool over rows (1/HW folded into w_img_eff).
    b_conv_row = pp_ref[R_BIAS:R_BIAS + 1, :]                  # (1, 128)
    acc = None
    for di in range(KH):
        wc = pp_ref[R_WC + di * IMG_LANES:
                    R_WC + (di + 1) * IMG_LANES, :]            # (72, 128)
        part = jnp.dot(taps_ref[di], wc,
                       preferred_element_type=f32)             # (B*H, 128)
        acc = part if acc is None else acc + part
    conv = jnp.maximum(acc + b_conv_row, 0.0)                  # (B*H, 128)
    S = jnp.sum(conv.reshape(B, H, CONV_LANES), axis=1)        # (B, 128)

    # ---- carve activations (single merged DMA): question / mask / lidar
    a = act_ref[...]                                           # (B, L+1, 32)
    q = a[:, 0:L, :]                                           # (B, L, E_TXT)
    m = a[:, L, 0:L]                                           # (B, L)
    lidar = a[:, L, L:L + D_LIDAR]                             # (B, D_LIDAR)

    # ---- text_encoder: masked mean pool over the sequence (recip on EUP)
    msum = jnp.sum(q * m[:, :, None], axis=1)                  # (B, E_TXT)
    denom = jnp.maximum(jnp.sum(m, axis=1, keepdims=True), 1.0)
    pooled_txt = msum * pl.reciprocal(denom, approx=True)      # (B, E_TXT)

    # ---- encoder linears as two small partial dots (no lane concat)
    w_img = pp_ref[R_ENC:R_ENC + CONV_LANES, L_WIMG:L_WIMG + D_IMG]   # (128, 32)
    w_txt = pp_ref[R_ENC:R_ENC + E_TXT, L_WTXT:L_WTXT + D_TXT]        # (32, 32)
    b_img = pp_ref[R_BIAS + 1:R_BIAS + 2, 0:D_IMG]                    # (1, 32)
    b_txt = pp_ref[R_BIAS + 1:R_BIAS + 2, D_IMG:D_IMG + D_TXT]        # (1, 32)
    img_feat = jnp.maximum(
        jnp.dot(S, w_img, preferred_element_type=f32) + b_img, 0.0)   # (B, 32)
    txt_feat = jnp.maximum(
        jnp.dot(pooled_txt, w_txt, preferred_element_type=f32) + b_txt, 0.0)

    # ---- predictor: 3-way split-dot accumulation (no concat of nn_input)
    w1_img = pp_ref[R_ENC:R_ENC + D_IMG, L_W1:L_W1 + D_HID]           # (32, 64)
    w1_txt = pp_ref[R_ENC + D_IMG:R_ENC + D_ENC, L_W1:L_W1 + D_HID]   # (32, 64)
    w1_lid = pp_ref[R_ENC + D_ENC:R_ENC + D_CAT, L_W1:L_W1 + D_HID]   # (16, 64)
    b1 = pp_ref[R_BIAS + 1:R_BIAS + 2, 64:64 + D_HID]                 # (1, 64)
    h = jnp.dot(img_feat, w1_img, preferred_element_type=f32)
    h = h + jnp.dot(txt_feat, w1_txt, preferred_element_type=f32)
    h = h + jnp.dot(lidar, w1_lid, preferred_element_type=f32)
    h = jnp.maximum(h + b1, 0.0)                                      # (B, D_HID)

    w2 = pp_ref[R_W2:R_W2 + D_HID, L_W2:L_W2 + N_ANS]                 # (64, 10)
    b2 = pp_ref[R_BIAS + 2:R_BIAS + 3, 0:N_ANS]                       # (1, 10)
    out = jnp.dot(h, w2, preferred_element_type=f32) + b2
    out_ref[...] = out.astype(out_ref.dtype)


# ------------------------------ wrapper -------------------------------------
@jax.jit
def multiview_temporal_baseline(question, mask, img_nchw, lidar, packed_params):
    """Forward pass. img is NCHW (PyTorch convention); layout plumbing only here."""
    # Conv taps: NCHW->NHWC, zero-pad, flatten (col, chan) into lanes, then
    # stack the KH row-shifted views with both batches on sublanes (~28 KB).
    x = jnp.transpose(img_nchw, (0, 2, 3, 1))                  # (B, H, W, C_IN)
    xp = jnp.pad(x, ((0, 0), (1, 1), (1, 1), (0, 0)))          # (B, PH, PW, C_IN)
    x2d = xp.reshape(B, PH, IMG_LANES)                         # (B, PH, 72)
    taps = jnp.stack(
        [x2d[:, di:di + H, :].reshape(BH, IMG_LANES) for di in range(KH)],
        axis=0)                                                # (KH, B*H, 72)

    # Merge question / mask / lidar into a single (B, L+1, 32) activation DMA.
    pad = jnp.zeros((B, E_TXT - L - D_LIDAR), jnp.float32)     # (B, 8)
    aux = jnp.concatenate([mask.astype(jnp.float32), lidar, pad], axis=1)
    act = jnp.concatenate([question, aux[:, None, :]], axis=1)  # (B, L+1, 32)

    return pl.pallas_call(
        _baseline_kernel,
        out_shape=jax.ShapeDtypeStruct((B, N_ANS), jnp.float32),
        grid=(1,),
        in_specs=[
            pl.BlockSpec((KH, BH, IMG_LANES), lambda i: (0, 0, 0)),
            pl.BlockSpec((B, ACT_ROWS, E_TXT), lambda i: (0, 0, 0)),
            pl.BlockSpec((PACK_ROWS, PACK_COLS), lambda i: (0, 0)),
        ],
        out_specs=pl.BlockSpec((B, N_ANS), lambda i: (0, 0)),
        compiler_params=pltpu.CompilerParams(
            dimension_semantics=("arbitrary",)),
    )(taps, act, packed_params)


# --------------------- deterministic parameter init ------------------------
def init_params(key):
    ks = jax.random.split(key, 7)
    s = 0.1
    return dict(
        # conv weight pre-flattened in (kh, kw, cin) -> cout order
        # (equivalent to a PyTorch Conv2d weight (C_CONV, C_IN, KH, KW)
        #  permuted/reshaped).
        w_conv=s * jax.random.normal(ks[0], (KDIM, C_CONV), jnp.float32),
        b_conv=jnp.zeros((1, C_CONV), jnp.float32),
        w_img=s * jax.random.normal(ks[1], (C_CONV, D_IMG), jnp.float32),
        b_img=jnp.zeros((1, D_IMG), jnp.float32),
        w_txt=s * jax.random.normal(ks[2], (E_TXT, D_TXT), jnp.float32),
        b_txt=jnp.zeros((1, D_TXT), jnp.float32),
        w1=s * jax.random.normal(ks[3], (D_CAT, D_HID), jnp.float32),
        b1=jnp.zeros((1, D_HID), jnp.float32),
        w2=s * jax.random.normal(ks[4], (D_HID, N_ANS), jnp.float32),
        b2=jnp.zeros((1, N_ANS), jnp.float32),
    )


def pack_params(p):
    """One-time host-side weight re-layout into a single (352, 128) f32 buffer.

    * conv weight expanded into KH lane-banded matrices so the conv becomes
      three (B*H, 72) x (72, 128) matmuls with (out_col, out_chan) on lanes
    * 1/(H*W) mean-pool scale folded into the image linear
    * image / text / predictor weights and biases lane-packed side-by-side
    """
    w_conv = np.asarray(p["w_conv"], np.float32)               # (KDIM, C_CONV)
    b_conv = np.asarray(p["b_conv"], np.float32).reshape(C_CONV)
    w_img = np.asarray(p["w_img"], np.float32)                 # (C_CONV, D_IMG)
    b_img = np.asarray(p["b_img"], np.float32).reshape(D_IMG)
    w_txt = np.asarray(p["w_txt"], np.float32)                 # (E_TXT, D_TXT)
    b_txt = np.asarray(p["b_txt"], np.float32).reshape(D_TXT)
    w1 = np.asarray(p["w1"], np.float32)                       # (D_CAT, D_HID)
    b1 = np.asarray(p["b1"], np.float32).reshape(D_HID)
    w2 = np.asarray(p["w2"], np.float32)                       # (D_HID, N_ANS)
    b2 = np.asarray(p["b2"], np.float32).reshape(N_ANS)

    pk = np.zeros((PACK_ROWS, PACK_COLS), np.float32)

    # lane-banded conv weights:
    # Wc[di][s*C_IN + c, j*C_CONV + co] = w_conv[(di*KW + (s-j))*C_IN + c, co]
    for di in range(KH):
        wc = np.zeros((IMG_LANES, CONV_LANES), np.float32)
        for j in range(W):
            for dj in range(KW):
                s = j + dj
                t = (di * KW + dj) * C_IN
                wc[s * C_IN:(s + 1) * C_IN,
                   j * C_CONV:(j + 1) * C_CONV] = w_conv[t:t + C_IN, :]
        pk[R_WC + di * IMG_LANES:R_WC + (di + 1) * IMG_LANES, :] = wc

    # shared-row block: w_img_eff | w1 | (w_txt over w2)
    w_img_eff = np.tile(w_img / float(HW), (W, 1))             # (CONV_LANES, D_IMG)
    pk[R_ENC:R_ENC + CONV_LANES, L_WIMG:L_WIMG + D_IMG] = w_img_eff
    pk[R_ENC:R_ENC + D_CAT, L_W1:L_W1 + D_HID] = w1            # [img|txt|lidar] rows
    pk[R_ENC:R_ENC + E_TXT, L_WTXT:L_WTXT + D_TXT] = w_txt
    pk[R_W2:R_W2 + D_HID, L_W2:L_W2 + N_ANS] = w2

    # biases
    pk[R_BIAS, :CONV_LANES] = np.tile(b_conv, W)               # bias per (j, co)
    pk[R_BIAS + 1, 0:D_IMG] = b_img
    pk[R_BIAS + 1, D_IMG:D_IMG + D_TXT] = b_txt
    pk[R_BIAS + 1, 64:64 + D_HID] = b1
    pk[R_BIAS + 2, 0:N_ANS] = b2
    return jnp.asarray(pk)


# ------------------------- pure-JAX reference -------------------------------
def reference(question, mask, img_nchw, lidar, p):
    hi = jax.lax.Precision.HIGHEST
    x = jnp.transpose(img_nchw, (0, 2, 3, 1))
    xp = jnp.pad(x, ((0, 0), (1, 1), (1, 1), (0, 0)))
    taps = [xp[:, di:di + H, dj:dj + W, :] for di in range(KH) for dj in range(KW)]
    patches = jnp.concatenate(taps, axis=-1).reshape(B * HW, KDIM)
    conv = jnp.maximum(jnp.dot(patches, p["w_conv"], precision=hi) + p["b_conv"], 0.0)
    pooled = jnp.mean(conv.reshape(B, HW, C_CONV), axis=1)
    img_feat = jnp.maximum(jnp.dot(pooled, p["w_img"], precision=hi) + p["b_img"], 0.0)
    m = mask.astype(jnp.float32)
    msum = jnp.sum(question * m[:, :, None], axis=1)
    denom = jnp.maximum(jnp.sum(m, axis=1, keepdims=True), 1.0)
    txt_feat = jnp.maximum(jnp.dot(msum / denom, p["w_txt"], precision=hi) + p["b_txt"], 0.0)
    nn_input = jnp.concatenate([img_feat, txt_feat, lidar], axis=1)
    h = jnp.maximum(jnp.dot(nn_input, p["w1"], precision=hi) + p["b1"], 0.0)
    return jnp.dot(h, p["w2"], precision=hi) + p["b2"]


if __name__ == "__main__":
    key = jax.random.PRNGKey(0)
    k_q, k_i, k_l, k_p = jax.random.split(key, 4)

    question = jax.random.normal(k_q, (B, L, E_TXT), jnp.float32)
    # mask: first few tokens valid per example
    mask = (jnp.arange(L)[None, :] < jnp.array([[5], [8]])).astype(jnp.float32)
    img = jax.random.normal(k_i, (B, C_IN, H, W), jnp.float32)      # NCHW input
    lidar = jax.random.normal(k_l, (B, D_LIDAR), jnp.float32)
    params = init_params(k_p)
    packed = pack_params(params)        # one-time weight re-layout (host side)

    out = multiview_temporal_baseline(question, mask, img, lidar, packed)
    out = jax.block_until_ready(out)

    ref = reference(question, mask, img, lidar, params)
    assert out.shape == (B, N_ANS)
    # Tolerance covers TPU matmul precision modes and the approx EUP reciprocal
    # in the text-pool denominator; structural bugs would be >= O(0.1).
    assert jnp.allclose(out, ref, rtol=5e-3, atol=5e-3), "mismatch vs reference"

    print("KERNEL_OK")
</pallas_src>

<mosaic_0001>
module attributes {stable_mosaic.version = 11 : i64} {
  func.func @_baseline_kernel(%arg0: i32, %arg1: memref<3x32x72xf32, #tpu.memory_space<vmem>>, %arg2: memref<2x9x32xf32, #tpu.memory_space<vmem>>, %arg3: memref<352x128xf32, #tpu.memory_space<vmem>>, %arg4: memref<2x10xf32, #tpu.memory_space<vmem>>) attributes {dimension_semantics = [#tpu.dimension_semantics<arbitrary>], iteration_bounds = array<i64: 1>, scalar_prefetch = 0 : i64, scratch_operands = 0 : i64, tpu.core_type = #tpu.core_type<tc>, window_params = [{pipeline_mode = #tpu.pipeline_mode<synchronous>, transform_indices = @transform_0, window_bounds = array<i64: 3, 32, 72>}, {pipeline_mode = #tpu.pipeline_mode<synchronous>, transform_indices = @transform_1, window_bounds = array<i64: 2, 9, 32>}, {pipeline_mode = #tpu.pipeline_mode<synchronous>, transform_indices = @transform_2, window_bounds = array<i64: 352, 128>}, {pipeline_mode = #tpu.pipeline_mode<synchronous>, transform_indices = @transform_3, window_bounds = array<i64: 2, 10>}]} {
    %c344 = arith.constant 344 : index
    %c0 = arith.constant 0 : index
    %0 = vector.load %arg3[%c344, %c0] : memref<352x128xf32, #tpu.memory_space<vmem>>, vector<1x128xf32>
    %c0_0 = arith.constant 0 : index
    %c0_1 = arith.constant 0 : index
    %1 = vector.load %arg3[%c0_0, %c0_1] : memref<352x128xf32, #tpu.memory_space<vmem>>, vector<72x128xf32>
    %c0_2 = arith.constant 0 : index
    %c0_3 = arith.constant 0 : index
    %c0_4 = arith.constant 0 : index
    %2 = vector.load %arg1[%c0_2, %c0_3, %c0_4] : memref<3x32x72xf32, #tpu.memory_space<vmem>>, vector<1x32x72xf32>
    %3 = vector.shape_cast %2 : vector<1x32x72xf32> to vector<32x72xf32>
    %cst = arith.constant dense<0.000000e+00> : vector<32x128xf32>
    %4 = tpu.matmul %3, %1, %cst {dimension_numbers = #tpu.dot_dimension_numbers<[1], [0], [0], [1], [0, 0, 1, 1], [], []>} : vector<32x72xf32>, vector<72x128xf32>, vector<32x128xf32> -> vector<32x128xf32>
    %c72 = arith.constant 72 : index
    %c0_5 = arith.constant 0 : index
    %5 = vector.load %arg3[%c72, %c0_5] : memref<352x128xf32, #tpu.memory_space<vmem>>, vector<72x128xf32>
    %c1 = arith.constant 1 : index
    %c0_6 = arith.constant 0 : index
    %c0_7 = arith.constant 0 : index
    %6 = vector.load %arg1[%c1, %c0_6, %c0_7] : memref<3x32x72xf32, #tpu.memory_space<vmem>>, vector<1x32x72xf32>
    %7 = vector.shape_cast %6 : vector<1x32x72xf32> to vector<32x72xf32>
    %cst_8 = arith.constant dense<0.000000e+00> : vector<32x128xf32>
    %8 = tpu.matmul %7, %5, %cst_8 {dimension_numbers = #tpu.dot_dimension_numbers<[1], [0], [0], [1], [0, 0, 1, 1], [], []>} : vector<32x72xf32>, vector<72x128xf32>, vector<32x128xf32> -> vector<32x128xf32>
    %9 = arith.addf %4, %8 : vector<32x128xf32>
    %c144 = arith.constant 144 : index
    %c0_9 = arith.constant 0 : index
    %10 = vector.load %arg3[%c144, %c0_9] : memref<352x128xf32, #tpu.memory_space<vmem>>, vector<72x128xf32>
    %c2 = arith.constant 2 : index
    %c0_10 = arith.constant 0 : index
    %c0_11 = arith.constant 0 : index
    %11 = vector.load %arg1[%c2, %c0_10, %c0_11] : memref<3x32x72xf32, #tpu.memory_space<vmem>>, vector<1x32x72xf32>
    %12 = vector.shape_cast %11 : vector<1x32x72xf32> to vector<32x72xf32>
    %cst_12 = arith.constant dense<0.000000e+00> : vector<32x128xf32>
    %13 = tpu.matmul %12, %10, %cst_12 {dimension_numbers = #tpu.dot_dimension_numbers<[1], [0], [0], [1], [0, 0, 1, 1], [], []>} : vector<32x72xf32>, vector<72x128xf32>, vector<32x128xf32> -> vector<32x128xf32>
    %14 = arith.addf %9, %13 : vector<32x128xf32>
    %15 = vector.broadcast %0 : vector<1x128xf32> to vector<32x128xf32>
    %16 = arith.addf %14, %15 : vector<32x128xf32>
    %cst_13 = arith.constant 0.000000e+00 : f32
    %17 = vector.broadcast %cst_13 : f32 to vector<32x128xf32>
    %18 = arith.maximumf %16, %17 : vector<32x128xf32>
    %19 = vector.shape_cast %18 : vector<32x128xf32> to vector<2x16x128xf32>
    %cst_14 = arith.constant dense<0.000000e+00> : vector<2x128xf32>
    %20 = vector.multi_reduction <add>, %19, %cst_14 [1] : vector<2x16x128xf32> to vector<2x128xf32>
    %c0_15 = arith.constant 0 : index
    %c0_16 = arith.constant 0 : index
    %c0_17 = arith.constant 0 : index
    %21 = vector.load %arg2[%c0_15, %c0_16, %c0_17] : memref<2x9x32xf32, #tpu.memory_space<vmem>>, vector<2x9x32xf32>
    %22 = vector.extract_strided_slice %21 {offsets = [0, 0, 0], sizes = [2, 8, 32], strides = [1, 1, 1]} : vector<2x9x32xf32> to vector<2x8x32xf32>
    %23 = vector.extract_strided_slice %21 {offsets = [0, 8, 0], sizes = [2, 1, 8], strides = [1, 1, 1]} : vector<2x9x32xf32> to vector<2x1x8xf32>
    %24 = vector.shape_cast %23 : vector<2x1x8xf32> to vector<2x8xf32>
    %25 = vector.extract_strided_slice %21 {offsets = [0, 8, 8], sizes = [2, 1, 16], strides = [1, 1, 1]} : vector<2x9x32xf32> to vector<2x1x16xf32>
    %26 = vector.shape_cast %25 : vector<2x1x16xf32> to vector<2x16xf32>
    %27 = vector.shape_cast %24 : vector<2x8xf32> to vector<2x8x1xf32>
    %28 = vector.broadcast %27 : vector<2x8x1xf32> to vector<2x8x32xf32>
    %29 = arith.mulf %22, %28 : vector<2x8x32xf32>
    %cst_18 = arith.constant dense<0.000000e+00> : vector<2x32xf32>
    %30 = vector.multi_reduction <add>, %29, %cst_18 [1] : vector<2x8x32xf32> to vector<2x32xf32>
    %cst_19 = arith.constant dense<0.000000e+00> : vector<2xf32>
    %31 = vector.multi_reduction <add>, %24, %cst_19 [1] : vector<2x8xf32> to vector<2xf32>
    %32 = vector.shape_cast %31 : vector<2xf32> to vector<2x1xf32>
    %cst_20 = arith.constant 1.000000e+00 : f32
    %33 = vector.broadcast %cst_20 : f32 to vector<2x1xf32>
    %34 = arith.maximumf %32, %33 : vector<2x1xf32>
    %35 = tpu.reciprocal %34 {approx = true} : vector<2x1xf32> -> vector<2x1xf32>
    %36 = vector.broadcast %35 : vector<2x1xf32> to vector<2x32xf32>
    %37 = arith.mulf %30, %36 : vector<2x32xf32>
    %c216 = arith.constant 216 : index
    %c0_21 = arith.constant 0 : index
    %38 = vector.load %arg3[%c216, %c0_21] : memref<352x128xf32, #tpu.memory_space<vmem>>, vector<128x32xf32>
    %c216_22 = arith.constant 216 : index
    %c96 = arith.constant 96 : index
    %39 = vector.load %arg3[%c216_22, %c96] : memref<352x128xf32, #tpu.memory_space<vmem>>, vector<32x32xf32>
    %c345 = arith.constant 345 : index
    %c0_23 = arith.constant 0 : index
    %40 = vector.load %arg3[%c345, %c0_23] : memref<352x128xf32, #tpu.memory_space<vmem>>, vector<1x32xf32>
    %c345_24 = arith.constant 345 : index
    %c32 = arith.constant 32 : index
    %41 = vector.load %arg3[%c345_24, %c32] : memref<352x128xf32, #tpu.memory_space<vmem>>, vector<1x32xf32>
    %cst_25 = arith.constant dense<0.000000e+00> : vector<2x32xf32>
    %42 = tpu.matmul %20, %38, %cst_25 {dimension_numbers = #tpu.dot_dimension_numbers<[1], [0], [0], [1], [0, 0, 1, 1], [], []>} : vector<2x128xf32>, vector<128x32xf32>, vector<2x32xf32> -> vector<2x32xf32>
    %43 = vector.broadcast %40 : vector<1x32xf32> to vector<2x32xf32>
    %44 = arith.addf %42, %43 : vector<2x32xf32>
    %cst_26 = arith.constant 0.000000e+00 : f32
    %45 = vector.broadcast %cst_26 : f32 to vector<2x32xf32>
    %46 = arith.maximumf %44, %45 : vector<2x32xf32>
    %cst_27 = arith.constant dense<0.000000e+00> : vector<2x32xf32>
    %47 = tpu.matmul %37, %39, %cst_27 {dimension_numbers = #tpu.dot_dimension_numbers<[1], [0], [0], [1], [0, 0, 1, 1], [], []>} : vector<2x32xf32>, vector<32x32xf32>, vector<2x32xf32> -> vector<2x32xf32>
    %48 = vector.broadcast %41 : vector<1x32xf32> to vector<2x32xf32>
    %49 = arith.addf %47, %48 : vector<2x32xf32>
    %cst_28 = arith.constant 0.000000e+00 : f32
    %50 = vector.broadcast %cst_28 : f32 to vector<2x32xf32>
    %51 = arith.maximumf %49, %50 : vector<2x32xf32>
    %c216_29 = arith.constant 216 : index
    %c32_30 = arith.constant 32 : index
    %52 = vector.load %arg3[%c216_29, %c32_30] : memref<352x128xf32, #tpu.memory_space<vmem>>, vector<32x64xf32>
    %c248 = arith.constant 248 : index
    %c32_31 = arith.constant 32 : index
    %53 = vector.load %arg3[%c248, %c32_31] : memref<352x128xf32, #tpu.memory_space<vmem>>, vector<32x64xf32>
    %c280 = arith.constant 280 : index
    %c32_32 = arith.constant 32 : index
    %54 = vector.load %arg3[%c280, %c32_32] : memref<352x128xf32, #tpu.memory_space<vmem>>, vector<16x64xf32>
    %c345_33 = arith.constant 345 : index
    %c64 = arith.constant 64 : index
    %55 = vector.load %arg3[%c345_33, %c64] : memref<352x128xf32, #tpu.memory_space<vmem>>, vector<1x64xf32>
    %cst_34 = arith.constant dense<0.000000e+00> : vector<2x64xf32>
    %56 = tpu.matmul %46, %52, %cst_34 {dimension_numbers = #tpu.dot_dimension_numbers<[1], [0], [0], [1], [0, 0, 1, 1], [], []>} : vector<2x32xf32>, vector<32x64xf32>, vector<2x64xf32> -> vector<2x64xf32>
    %cst_35 = arith.constant dense<0.000000e+00> : vector<2x64xf32>
    %57 = tpu.matmul %51, %53, %cst_35 {dimension_numbers = #tpu.dot_dimension_numbers<[1], [0], [0], [1], [0, 0, 1, 1], [], []>} : vector<2x32xf32>, vector<32x64xf32>, vector<2x64xf32> -> vector<2x64xf32>
    %58 = arith.addf %56, %57 : vector<2x64xf32>
    %cst_36 = arith.constant dense<0.000000e+00> : vector<2x64xf32>
    %59 = tpu.matmul %26, %54, %cst_36 {dimension_numbers = #tpu.dot_dimension_numbers<[1], [0], [0], [1], [0, 0, 1, 1], [], []>} : vector<2x16xf32>, vector<16x64xf32>, vector<2x64xf32> -> vector<2x64xf32>
    %60 = arith.addf %58, %59 : vector<2x64xf32>
    %61 = vector.broadcast %55 : vector<1x64xf32> to vector<2x64xf32>
    %62 = arith.addf %60, %61 : vector<2x64xf32>
    %cst_37 = arith.constant 0.000000e+00 : f32
    %63 = vector.broadcast %cst_37 : f32 to vector<2x64xf32>
    %64 = arith.maximumf %62, %63 : vector<2x64xf32>
    %c248_38 = arith.constant 248 : index
    %c96_39 = arith.constant 96 : index
    %65 = vector.load %arg3[%c248_38, %c96_39] : memref<352x128xf32, #tpu.memory_space<vmem>>, vector<64x10xf32>
    %c346 = arith.constant 346 : index
    %c0_40 = arith.constant 0 : index
    %66 = vector.load %arg3[%c346, %c0_40] : memref<352x128xf32, #tpu.memory_space<vmem>>, vector<1x10xf32>
    %cst_41 = arith.constant dense<0.000000e+00> : vector<2x10xf32>
    %67 = tpu.matmul %64, %65, %cst_41 {dimension_numbers = #tpu.dot_dimension_numbers<[1], [0], [0], [1], [0, 0, 1, 1], [], []>} : vector<2x64xf32>, vector<64x10xf32>, vector<2x10xf32> -> vector<2x10xf32>
    %68 = vector.broadcast %66 : vector<1x10xf32> to vector<2x10xf32>
    %69 = arith.addf %67, %68 : vector<2x10xf32>
    %c0_42 = arith.constant 0 : index
    %c0_43 = arith.constant 0 : index
    %70 = vector.load %arg4[%c0_42, %c0_43] : memref<2x10xf32, #tpu.memory_space<vmem>>, vector<2x10xf32>
    tpu.vector_store %arg4[%c0_42, %c0_43], %69 {strides = array<i32>} : memref<2x10xf32, #tpu.memory_space<vmem>>, vector<2x10xf32>,
    return
  }
  func.func @transform_0(%arg0: i32) -> (i32, i32, i32) {
    %c0_i32 = arith.constant 0 : i32
    %c0_i32_0 = arith.constant 0 : i32
    %c0_i32_1 = arith.constant 0 : i32
    %c0_i32_2 = arith.constant 0 : i32
    return %c0_i32, %c0_i32_0, %c0_i32_1 : i32, i32, i32
  }
  func.func @transform_1(%arg0: i32) -> (i32, i32, i32) {
    %c0_i32 = arith.constant 0 : i32
    %c0_i32_0 = arith.constant 0 : i32
    %c0_i32_1 = arith.constant 0 : i32
    %c0_i32_2 = arith.constant 0 : i32
    return %c0_i32, %c0_i32_0, %c0_i32_1 : i32, i32, i32
  }
  func.func @transform_2(%arg0: i32) -> (i32, i32) {
    %c0_i32 = arith.constant 0 : i32
    %c0_i32_0 = arith.constant 0 : i32
    %c0_i32_1 = arith.constant 0 : i32
    return %c0_i32, %c0_i32_0 : i32, i32
  }
  func.func @transform_3(%arg0: i32) -> (i32, i32) {
    %c0_i32 = arith.constant 0 : i32
    %c0_i32_0 = arith.constant 0 : i32
    %c0_i32_1 = arith.constant 0 : i32
    return %c0_i32, %c0_i32_0 : i32, i32
  }
}

</mosaic_0001>

<bundles_post_ra>
// kernel: multiview_temporal_baseline.1
= control target key start
LH: loop header
LB: loop body
LE: loop exit
PB: predicated region body
PF: predicated region fallthrough
CT: control target
= control target key end

     0   :  { %v383_v17 = vlaneseq  ;;  %vm417_vm0 = vcmask 1041409   ;;  %vm43_vm1 = vcmask 588800   ;;  %s1676_s0 = inlined_call_operand.vmem [shape: f32[3,32,72], index: 0, kind: input, shape index: {}]   ;;  %s1677_s1 = inlined_call_operand.vmem [shape: f32[2,9,32], index: 1, kind: input, shape index: {}]   ;;  %s1678_s2 = inlined_call_operand.vmem [shape: f32[352,128], index: 2, kind: input, shape index: {}]   ;;  %s1679_s3 = inlined_call_operand.hbm [shape: f32[2,10], index: 3, kind: output, shape index: {}]  }
   0x1   :  { %v37_v0 = vld [vmem:[%s1678_s2 + $0x88] sm:$0xff]  ;;  %v24_v1 = vld [vmem:[%s1678_s2 + $0x40] sm:$0xff]  ;;  %v23_v3 = vld [vmem:[%s1678_s2 + $0x38] sm:$0xff] }
   0x2   :  { %v36_v2 = vld [vmem:[%s1678_s2 + $0x80] sm:$0xff]  ;;  %1140 = vmatprep.subr.mxu0 %v37_v0  ;;  %1164 = vmatprep.subr.mxu1 %v24_v1  ;;  %v35_v4 = vld [vmem:[%s1678_s2 + $0x78] sm:$0xff]  ;;  %v22_v5 = vld [vmem:[%s1678_s2 + $0x30] sm:$0xff] }
   0x3   :  { %1141 = vmatpush3.msra.mxu0 %v37_v0  ;;  %1165 = vmatpush3.msra.mxu1 %v24_v1  ;;  %v34_v6 = vld [vmem:[%s1678_s2 + $0x70] sm:$0xff]  ;;  %v21_v7 = vld [vmem:[%s1678_s2 + $0x28] sm:$0xff]  ;;  %v20_v9 = vld [vmem:[%s1678_s2 + $0x20] sm:$0xff] }
   0x4   :  { %1142 = vmatprep.subr.mxu0 %v36_v2  ;;  %1166 = vmatprep.subr.mxu1 %v23_v3  ;;  %v33_v8 = vld [vmem:[%s1678_s2 + $0x68] sm:$0xff]  ;;  %v32_v10 = vld [vmem:[%s1678_s2 + $0x60] sm:$0xff]  ;;  %v19_v11 = vld [vmem:[%s1678_s2 + $0x18] sm:$0xff] }
   0x5   :  { %1143 = vmatpush3.msra.mxu0 %v36_v2  ;;  %1167 = vmatpush3.msra.mxu1 %v23_v3  ;;  %v31_v12 = vld [vmem:[%s1678_s2 + $0x58] sm:$0xff]  ;;  %v18_v13 = vld [vmem:[%s1678_s2 + $0x10] sm:$0xff]  ;;  %v17_v15 = vld [vmem:[%s1678_s2 + $0x8] sm:$0xff] }
   0x6   :  { %1144 = vmatprep.subr.mxu0 %v35_v4  ;;  %1168 = vmatprep.subr.mxu1 %v22_v5  ;;  %v30_v14 = vld [vmem:[%s1678_s2 + $0x50] sm:$0xff]  ;;  %v1415_v16 = vld [vmem:[%s1677_s1 + $0x18] sm:$0x1]  ;;  %v29_v18 = vld [vmem:[%s1678_s2 + $0x48] sm:$0xff] }
   0x7   :  { %1145 = vmatpush3.msra.mxu0 %v35_v4  ;;  %1169 = vmatpush3.msra.mxu1 %v22_v5  ;;  %v16_v19 = vld [vmem:[%s1678_s2] sm:$0xff]  ;;  %v380_v20 = vld [vmem:[%s1677_s1 + $0x8] sm:$0x1]  ;;  %v416_v21 = vrot.slane %v1415_v16, 7 }
   0x8   :  { %1146 = vmatprep.subr.mxu0 %v34_v6  ;;  %1170 = vmatprep.subr.mxu1 %v21_v7  ;;  %v1029_v22 = vld [vmem:[%s1676_s0 + $0x20] sm:$0xff] }
   0x9   :  { %1147 = vmatpush3.msra.mxu0 %v34_v6  ;;  %1171 = vmatpush3.msra.mxu1 %v21_v7 }
   0xa   :  { %1148 = vmatprep.subr.mxu0 %v33_v8  ;;  %1172 = vmatprep.subr.mxu1 %v20_v9 }
   0xb   :  { %1149 = vmatpush3.msra.mxu0 %v33_v8  ;;  %1173 = vmatpush3.msra.mxu1 %v20_v9 }
   0xc   :  { %1150 = vmatprep.subr.mxu0 %v32_v10  ;;  %1174 = vmatprep.subr.mxu1 %v19_v11 }
   0xd   :  { %1151 = vmatpush3.msra.mxu0 %v32_v10  ;;  %1175 = vmatpush3.msra.mxu1 %v19_v11 }
   0xe   :  { %1152 = vmatprep.subr.mxu0 %v31_v12  ;;  %1176 = vmatprep.subr.mxu1 %v18_v13 }
   0xf   :  { %1153 = vmatpush3.msra.mxu0 %v31_v12  ;;  %1177 = vmatpush3.msra.mxu1 %v18_v13 }
  0x10   :  { %1154 = vmatprep.subr.mxu0 %v30_v14  ;;  %1178 = vmatprep.subr.mxu1 %v17_v15 }
  0x11   :  { %8 = vsyncpa [#allocation3], 0  ;;  %1155 = vmatpush3.msra.mxu0 %v30_v14  ;;  %1179 = vmatpush3.msra.mxu1 %v17_v15  ;;  %v25_v23 = vld [vmem:[%s1676_s0] sm:$0xff]  ;;  %v1030_v24 = vld [vmem:[%s1676_s0 + $0x28] sm:$0xff]  ;;  %v1440_v26 = vsel %vm417_vm0, %v416_v21, %v380_v20  ;;  %vm420_vm2 = vcmask 58368   ;;  %v1442_v27 = vshrl.u32 %v383_v17, 7 }
  0x12   :  { %1156 = vmatprep.subr.mxu0 %v29_v18  ;;  %1180 = vmatprep.subr.mxu1 %v16_v19  ;;  %v26_v25 = vld [vmem:[%s1676_s0 + $0x8] sm:$0xff]  ;;  %v246_v28 = vld [vmem:[%s1678_s2 + $0xd0] sm:$0xff]  ;;  %v421_v32 = vsel %vm420_vm2, %v1440_v26, 0.0  ;;  %v28_v33 = vld [vmem:[%s1676_s0 + $0x18] sm:$0xff]  ;;  %s1337_s5 = smov 32   ;;  %v1338_v53 = vmov 0.0  }
  0x13   :  { %1157 = vmatpush3.msra.mxu0 %v29_v18  ;;  %1158 = vmatprep.mubr.msk.f32.mxu0 %vm43_vm1, %v1029_v22  ;;  %v1031_v29 = vld [vmem:[%s1676_s0 + $0x30] sm:$0xff]  ;;  %v245_v31 = vld [vmem:[%s1678_s2 + $0xc8] sm:$0xff]  ;;  %v385_v34 = vsub.s32 0, %v1442_v27  ;;  %v244_v35 = vld [vmem:[%s1678_s2 + $0xc0] sm:$0xff]  ;;  %vm1339_vm3 = vmmov 0   ;;  %s1340_s19 = smov 96  }
  0x14   :  { %1181 = vmatpush3.msra.mxu1 %v16_v19  ;;  %1182 = vmatprep.mubr.msk.f32.mxu1 %vm43_vm1, %v25_v23  ;;  %v27_v30 = vld [vmem:[%s1676_s0 + $0x10] sm:$0xff]  ;;  %v1032_v36 = vld [vmem:[%s1676_s0 + $0x38] sm:$0xff]  ;;  %v1041_v37 = vld [vmem:[%s1676_s0 + $0x40] sm:$0xff]  ;;  %s1341_s22 = smov 120   ;;  %vm399_vm4 = vcmask 261120   ;;  %vm815_vm5 = vcmask 130048  }
  0x15   :  { %1159 = vmatmul.mubr.msk.f32.vlgmr.msra.gmra.mxu0 %vm43_vm1, %v1030_v24  ;;  %1183 = vmatmul.mubr.msk.f32.vlgmr.msra.gmra.mxu1 %vm43_vm1, %v26_v25  ;;  %v386_v38 = vrot.slane %v380_v20, %v385_v34  ;;  %v243_v39 = vld [vmem:[%s1678_s2 + $0xb8] sm:$0xff]  ;;  %v242_v40 = vld [vmem:[%s1678_s2 + $0xb0] sm:$0xff]  ;;  %v241_v41 = vld [vmem:[%s1678_s2 + $0xa8] sm:$0xff]  ;;  %v393_v52 = vrot.slane %v1415_v16, %v385_v34  ;;  %vm939_vm6 = vcmask 523264   ;;  %s1343_s29 = smov [#allocation2]   ;;  %vm1013_vm7 = vcmask 74752  }
  0x16   :  { %1188 = vmatprep.subr.mxu0 %v246_v28  ;;  %1161 = vmatprep.mubr.msk.f32.mxu0 %vm43_vm1, %v1031_v29  ;;  %v1491_v42 = vld [vmem:[%s1678_s2 + $0xf0] sm:$0xff]  ;;  %v240_v43 = vld [vmem:[%s1678_s2 + $0xa0] sm:$0xff]  ;;  %v239_v44 = vld [vmem:[%s1678_s2 + $0x98] sm:$0xff]  ;;  %s1021_s30 = sshll.u32 %s1343_s29, 4  ;;  %s1022_s30 = int_to_ptr.vmem [resolvable:$true] %s1021_s30 }
  0x17   :  { %1189 = vmatpush3.msra.mxu0 %v246_v28  ;;  %1185 = vmatprep.mubr.msk.f32.mxu1 %vm43_vm1, %v27_v30  ;;  %v1504_v45 = vld [vmem:[%s1678_s2 + $0xe8] sm:$0xff]  ;;  %v238_v46 = vld [vmem:[%s1678_s2 + $0x90] sm:$0xff]  ;;  %v1517_v48 = vld [vmem:[%s1678_s2 + $0xe0] sm:$0xff]  ;;  %s1315_s4 = scalar_lea.vmem %s1022_s30, 32  ;;  %p1320_p1 = scmp.lt.s32.totalorder %s1022_s30, %s1022_s30 }
  0x18   :  { %1190 = vmatprep.subr.mxu0 %v245_v31  ;;  %422 = vadd.xlane.f32.xlu0 %v421_v32  ;;  %v1042_v47 = vld [vmem:[%s1676_s0 + $0x48] sm:$0xff]  ;;  %v1043_v49 = vld [vmem:[%s1676_s0 + $0x50] sm:$0xff]  ;;  %v1044_v50 = vld [vmem:[%s1676_s0 + $0x58] sm:$0xff]  ;;  %p1316_p0 = scmp.ne.s32.totalorder %s1022_s30, %s1315_s4  ;;  %p1321_p2 = scmp.lt.s32.totalorder %s1315_s4, %s1315_s4 }
  0x19   :  { %1191 = vmatpush3.msra.mxu0 %v245_v31  ;;  %1186 = vmatmul.mubr.msk.f32.gmra.mxu1 %vm43_vm1, %v28_v33  ;;  %v1532_v51 = vld [vmem:[%s1678_s2 + $0xd8] sm:$0xff]  ;;  %v447_v54 = vld [vmem:[%s1678_s2 + $0x150] sm:$0xff]  ;;  %v446_v55 = vld [vmem:[%s1678_s2 + $0x148] sm:$0xff] }
  0x1a   :  { %1192 = vmatprep.subr.mxu0 %v244_v35  ;;  %1162 = vmatmul.mubr.msk.f32.gmra.mxu0 %vm43_vm1, %v1032_v36  ;;  %v445_v56 = vld [vmem:[%s1678_s2 + $0x140] sm:$0xff]  ;;  %v444_v57 = vld [vmem:[%s1678_s2 + $0x138] sm:$0xff]  ;;  %v443_v58 = vld [vmem:[%s1678_s2 + $0x130] sm:$0xff]  ;;  %p1322_p3 = por %p1321_p2, %p1320_p1 }
  0x1b   :  { %1193 = vmatpush3.msra.mxu0 %v244_v35  ;;  %1206 = vmatprep.mubr.msk.f32.mxu0 %vm43_vm1, %v1041_v37  ;;  %v442_v59 = vld [vmem:[%s1678_s2 + $0x128] sm:$0xff]  ;;  %v441_v60 = vld [vmem:[%s1678_s2 + $0x120] sm:$0xff]  ;;  %v440_v61 = vld [vmem:[%s1678_s2 + $0x118] sm:$0xff] }
  0x1c   :  { %1194 = vmatprep.subr.mxu0 %v243_v39  ;;  %388 = vbcast.lane.b32.xlu1 %v386_v38, 256  ;;  %v439_v62 = vld [vmem:[%s1678_s2 + $0x110] sm:$0xff]  ;;  %v438_v63 = vld [vmem:[%s1678_s2 + $0x108] sm:$0xff]  ;;  %v437_v0 = vld [vmem:[%s1678_s2 + $0x100] sm:$0xff]  ;;  %p1323_p4 = pnand %p1322_p3, %p1316_p0 }
  0x1d   :  { %1195 = vmatpush3.msra.mxu0 %v243_v39  ;;  %1212 = vmatprep.subr.mxu1 %v1338_v53  ;;  %v1587_v1 = vld [vmem:[%s1678_s2 + $0xf8] sm:$0xff]  ;;  %v381_v8 = vld [vmem:[%s1677_s1 + $0x10] sm:$0xff]  ;;  %v379_v13 = vld [vmem:[%s1677_s1] sm:$0xff]  ;;  %s1342_s1 = smov 64  }
  0x1e   :  { %1196 = vmatprep.subr.mxu0 %v242_v40  ;;  %1213 = vmatpush3.msra.mxu1 %v447_v54  ;;  %v1607_v2 = vld [vmem:[%s1678_s2 + $0x159] ss:$0 sm:$0xff]  ;;  %v1049_v19 = vld [vmem:[%s1678_s2 + $0x158] ss:$0 sm:$0xff] }
  0x1f   :  { %1197 = vmatpush3.msra.mxu0 %v242_v40  ;;  %1214 = vmatprep.subr.mxu1 %v1338_v53 }
  0x20   :  { %1198 = vmatprep.subr.mxu0 %v241_v41  ;;  %542 = vrot.lane.b32.xlu1 %v1491_v42, %s1337_s5 }
  0x21   :  { %1199 = vmatpush3.msra.mxu0 %v241_v41  ;;  %1215 = vmatpush3.msra.mxu1 %v446_v55 }
  0x22   :  { %1200 = vmatprep.subr.mxu0 %v240_v43  ;;  %1216 = vmatprep.subr.mxu1 %v1338_v53 }
  0x23   :  { %1201 = vmatpush3.msra.mxu0 %v240_v43  ;;  %1217 = vmatpush3.msra.mxu1 %v445_v56 }
  0x24   :  { %1202 = vmatprep.subr.mxu0 %v239_v44  ;;  %540 = vrot.lane.b32.xlu1 %v1504_v45, %s1337_s5 }
  0x25   :  { %1203 = vmatpush3.msra.mxu0 %v239_v44  ;;  %1218 = vmatprep.subr.mxu1 %v1338_v53 }
  0x26   :  { %1204 = vmatprep.subr.mxu0 %v238_v46  ;;  %1219 = vmatpush3.msra.mxu1 %v444_v57 }
  0x27   :  { %1205 = vmatpush3.msra.mxu0 %v238_v46  ;;  %1220 = vmatprep.subr.mxu1 %v1338_v53 }
  0x28   :  { %1207 = vmatmul.mubr.msk.f32.vlgmr.msra.gmra.mxu0 %vm43_vm1, %v1042_v47  ;;  %538 = vrot.lane.b32.xlu1 %v1517_v48, %s1337_s5 }
  0x29   :  { %1209 = vmatprep.mubr.msk.f32.mxu0 %vm43_vm1, %v1043_v49  ;;  %1258 = vmatprep.subr.mxu0 %v1338_v53 }
  0x2a   :  { %1221 = vmatpush3.msra.mxu1 %v443_v58  ;;  %1244 = vmatprep.mubr.msk.f32.mxu1 %vm1339_vm3, %v1338_v53 }
  0x2b   :  { %1222 = vmatprep.subr.mxu1 %v1338_v53 }
  0x2c   :  { %1210 = vmatmul.mubr.msk.f32.gmra.mxu0 %vm43_vm1, %v1044_v50  ;;  %536 = vrot.lane.b32.xlu1 %v1532_v51, %s1337_s5 }
  0x2d   :  { %1223 = vmatpush3.msra.mxu1 %v442_v59  ;;  %1266 = vmatprep.mubr.msk.f32.mxu0 %vm1339_vm3, %v1338_v53 }
  0x2e   :  { %395 = vbcast.lane.b32.xlu0 %v393_v52, 256  ;;  %1224 = vmatprep.subr.mxu1 %v1338_v53 }
  0x2f   :  { %1225 = vmatpush3.msra.mxu1 %v441_v60 }
  0x30   :  { %1226 = vmatprep.subr.mxu1 %v1338_v53  ;;  %641 = vrot.lane.b32.xlu1 %v439_v62, %s1340_s19 }
  0x31   :  { %1227 = vmatpush3.msra.mxu1 %v440_v61 }
  0x32   :  { %1228 = vmatprep.subr.mxu1 %v1338_v53  ;;  %726 = vrot.lane.b32.xlu0 %v1491_v42, %s1340_s19 }
  0x33   :  { %1229 = vmatpush3.msra.mxu1 %v439_v62 }
  0x34   :  { %1230 = vmatprep.subr.mxu1 %v1338_v53  ;;  %639 = vrot.lane.b32.xlu1 %v438_v63, %s1340_s19 }
  0x35   :  { %1231 = vmatpush3.msra.mxu1 %v438_v63 }
  0x36   :  { %1232 = vmatprep.subr.mxu1 %v1338_v53  ;;  %637 = vrot.lane.b32.xlu0 %v437_v0, %s1340_s19 }
  0x37   :  { %1233 = vmatpush3.msra.mxu1 %v437_v0 }
  0x38   :  { %1234 = vmatprep.subr.mxu1 %v1338_v53  ;;  %549 = vrot.lane.b32.xlu1 %v1607_v2, %s1340_s19 }
  0x39   :  { %1235 = vmatpush3.msra.mxu1 %v1587_v1 }
  0x3a   :  { %1236 = vmatprep.subr.mxu1 %v1338_v53  ;;  %635 = vrot.lane.b32.xlu0 %v1587_v1, %s1340_s19 }
  0x3b   :  { %1237 = vmatpush3.msra.mxu1 %v1491_v42 }
  0x3c   :  { %1238 = vmatprep.subr.mxu1 %v1338_v53  ;;  %724 = vrot.lane.b32.xlu1 %v1504_v45, %s1340_s19 }
  0x3d   :  { %1239 = vmatpush3.msra.mxu1 %v1504_v45 }
  0x3e   :  { %1240 = vmatprep.subr.mxu1 %v1338_v53  ;;  %720 = vrot.lane.b32.xlu0 %v1532_v51, %s1340_s19 }
  0x3f   :  { %1241 = vmatpush3.msra.mxu1 %v1517_v48 }
  0x40   :  { %1242 = vmatprep.subr.mxu1 %v1338_v53  ;;  %722 = vrot.lane.b32.xlu1 %v1517_v48, %s1340_s19 }
  0x41   :  { %1243 = vmatpush3.msra.mxu1 %v1532_v51 }
  0x42   :  { %1247 = vmatprep.subr.mxu1 %v1338_v53  ;;  %809 = vrot.lane.b32.xlu0 %v440_v61, %s1340_s19 }
  0x44   :  { %811 = vrot.lane.b32.xlu1 %v441_v60, %s1340_s19 }
  0x46   :  { %929 = vrot.lane.b32.xlu0 %v443_v58, %s1337_s5 }
  0x48   :  { %805 = vrot.lane.b32.xlu1 %v1440_v26, %s1341_s22 }
  0x4a   :  { %925 = vrot.lane.b32.xlu0 %v441_v60, %s1337_s5 }
  0x4c   :  { %927 = vrot.lane.b32.xlu1 %v442_v59, %s1337_s5 }
  0x4e   :  { %921 = vrot.lane.b32.xlu0 %v439_v62, %s1337_s5 }
  0x50   :  { %923 = vrot.lane.b32.xlu1 %v440_v61, %s1337_s5 }
  0x52   :  { %889 = vrot.lane.b32.xlu0 %v1607_v2, %s1342_s1 }
  0x54   :  { %919 = vrot.lane.b32.xlu1 %v438_v63, %s1337_s5 }
  0x56   :  { %915 = vrot.lane.b32.xlu0 %v1587_v1, %s1337_s5 }
  0x58   :  { %917 = vrot.lane.b32.xlu1 %v437_v0, %s1337_s5 }
  0x8e   :  { %v389_v12 = vpop.permute.xlu1 %388 }
  0x8f   :  { %v397_v18 = vmul.f32 %v389_v12, %v379_v13 }
  0x91   :  { %v400_v31 = vsel %vm399_vm4, %v397_v18, 0.0 }
  0x92   :  { %v543_v23 = vpop.permute.xlu1 %542  ;;  %v401_v38 = vrot.slane %v400_v31, 4 }
  0x94   :  { %v402_v46 = vadd.f32 %v401_v38, %v400_v31 }
  0x96   :  { %v541_v43 = vpop.permute.xlu1 %540  ;;  %v403_v58 = vrot.slane %v402_v46, 2 }
  0x98   :  { %v404_v0 = vadd.f32 %v403_v58, %v402_v46 }
  0x9a   :  { %v539_v54 = vpop.permute.xlu1 %538 }
  0xa1   :  { %v423_v3 = vpop.xlane.xlu0 %422 }
  0xa2   :  { %v424_v26 = vmax.f32 %v423_v3, 1.0  ;;  %v537_v3 = vpop.permute.xlu1 %536 }
  0xa4   :  { %1313 = vrcp.f32 %v424_v26 }
  0xa5   :  { %v396_v5 = vpop.permute.xlu0 %395 }
  0xa6   :  { %v398_v10 = vmul.f32 %v396_v5, %v381_v8 }
  0xa8   :  { %v407_v17 = vsel %vm399_vm4, %v398_v10, 0.0  ;;  %v642_v10 = vpop.permute.xlu1 %641 }
  0xa9   :  { %v408_v27 = vrot.slane %v407_v17, 4  ;;  %1259 = vmatpush3.msra.mxu0 %v642_v10 }
  0xaa   :  { %1260 = vmatprep.subr.mxu0 %v1338_v53 }
  0xab   :  { %v409_v37 = vadd.f32 %v408_v27, %v407_v17 }
  0xac   :  { %v640_v17 = vpop.permute.xlu1 %639 }
  0xad   :  { %v410_v50 = vrot.slane %v409_v37, 2  ;;  %1261 = vmatpush3.msra.mxu0 %v640_v17 }
  0xae   :  { %1262 = vmatprep.subr.mxu0 %v1338_v53 }
  0xaf   :  { %v411_v57 = vadd.f32 %v410_v50, %v409_v37 }
  0xb1   :  { %v1314_v61 = vpop.eup %1313  ;;  %v412_v63 = vrot.slane %v411_v57, 1 }
  0xb3   :  { %v413_v8 = vadd.f32 %v412_v63, %v411_v57 }
  0xd5   :  { %v1160_v4 = vpop.f32.mrf.mxu0  ;;  %v1184_v6 = vpop.f32.mrf.mxu1 }
  0xd6   :  { %v225_v16 = vadd.f32 %v1184_v6, %v1160_v4 }
  0xd7   :  { %v122_v7 = vpop.f32.mrf.mxu0  ;;  %v219_v11 = vpop.f32.mrf.mxu1 }
  0xd8   :  { %v220_v21 = vadd.f32 %v219_v11, %v122_v7  ;;  %v427_v7 = vrot.slane %v1314_v61, 1  ;;  %v727_v11 = vpop.permute.xlu0 %726 }
  0xd9   :  { %v1187_v14 = vpop.f32.mrf.mxu1 }
  0xda   :  { %v1163_v9 = vpop.f32.mrf.mxu0 }
  0xdb   :  { %v229_v24 = vpop.f32.mrf.mxu1  ;;  %v235_v28 = vadd.f32 %v1187_v14, %v1163_v9  ;;  %v405_v9 = vrot.slane %v404_v0, 1  ;;  %v431_v14 = vmul.f32 %v427_v7, %v413_v8 }
  0xdc   :  { %v132_v15 = vpop.f32.mrf.mxu0  ;;  %v638_v18 = vpop.permute.xlu0 %637 }
  0xdd   :  { %v230_v33 = vadd.f32 %v229_v24, %v132_v15  ;;  %v406_v15 = vadd.f32 %v405_v9, %v404_v0  ;;  %1263 = vmatpush3.msra.mxu0 %v638_v18 }
  0xde   :  { %1264 = vmatprep.subr.mxu0 %v1338_v53 }
  0xe8   :  { %v1208_v20 = vpop.f32.mrf.mxu0 }
  0xe9   :  { %v350_v22 = vadd.f32 %v1208_v20, %v225_v16  ;;  %v430_v20 = vmul.f32 %v1314_v61, %v406_v15 }
  0xea   :  { %v330_v25 = vpop.f32.mrf.mxu0 }
  0xeb   :  { %v358_v29 = vadd.f32 %v1049_v19, %v350_v22  ;;  %v349_v30 = vadd.f32 %v330_v25, %v220_v21  ;;  %v550_v21 = vpop.permute.xlu1 %549  ;;  %v636_v22 = vpop.permute.xlu0 %635 }
  0xec   :  { %v1211_v32 = vpop.f32.mrf.mxu0  ;;  %1265 = vmatpush3.msra.mxu0 %v636_v22 }
  0xed   :  { %v357_v34 = vadd.f32 %v1049_v19, %v349_v30  ;;  %v352_v35 = vadd.f32 %v1211_v32, %v235_v28  ;;  %v362_v39 = vmax.f32 %v358_v29, 0.0  ;;  %1280 = vmatprep.subr.mxu0 %v1338_v53 }
  0xee   :  { %v340_v36 = vpop.f32.mrf.mxu0 }
  0xef   :  { %v361_v40 = vmax.f32 %v357_v34, 0.0  ;;  %v360_v41 = vadd.f32 %v1049_v19, %v352_v35  ;;  %v351_v42 = vadd.f32 %v340_v36, %v230_v33  ;;  %v725_v24 = vpop.permute.xlu1 %724  ;;  %v721_v26 = vpop.permute.xlu0 %720 }
  0xf1   :  { %v365_v44 = vadd.f32 %v362_v39, %v361_v40  ;;  %v359_v45 = vadd.f32 %v1049_v19, %v351_v42  ;;  %v364_v48 = vmax.f32 %v360_v41, 0.0  ;;  %v530_v19 = vrot.slane %v431_v14, 7 }
  0xf3   :  { %v366_v47 = vrot.slane %v365_v44, 4  ;;  %v363_v49 = vmax.f32 %v359_v45, 0.0  ;;  %v723_v25 = vpop.permute.xlu1 %722  ;;  %v810_v36 = vpop.permute.xlu0 %809 }
  0xf5   :  { %v367_v51 = vadd.f32 %v366_v47, %v365_v44  ;;  %v372_v52 = vadd.f32 %v364_v48, %v363_v49 }
  0xf7   :  { %v368_v55 = vrot.slane %v367_v51, 2  ;;  %v373_v56 = vrot.slane %v372_v52, 4  ;;  %v812_v32 = vpop.permute.xlu1 %811  ;;  %v930_v1 = vpop.permute.xlu0 %929 }
  0xf9   :  { %v369_v59 = vadd.f32 %v368_v55, %v367_v51  ;;  %v374_v60 = vadd.f32 %v373_v56, %v372_v52  ;;  %v1055_v56 = vld [vmem:[%s1678_s2 + $0x15a] ss:$0 sm:$0xff] }
  0xfb   :  { %v375_v62 = vrot.slane %v374_v60, 2  ;;  %v370_v4 = vrot.slane %v369_v59, 1  ;;  %v806_v37 = vpop.permute.xlu1 %805  ;;  %v926_v38 = vpop.permute.xlu0 %925 }
  0xfd   :  { %v376_v5 = vadd.f32 %v375_v62, %v374_v60  ;;  %v371_v12 = vadd.f32 %v370_v4, %v369_v59 }
  0xff   :  { %v377_v6 = vrot.slane %v376_v5, 1  ;;  %v922_v40 = vpop.permute.xlu0 %921 }
 0x101   :  { %v378_v13 = vadd.f32 %v377_v6, %v376_v5 }
 0x103   :  { %v455_v16 = vsel %vm417_vm0, %v378_v13, %v371_v12  ;;  %v890_v42 = vpop.permute.xlu0 %889 }
 0x104   :  { %1245 = vmatmul.mubr.f32.vlgmr.msra.gmra.mxu1 %v455_v16 }
 0x105   :  { %1248 = vmatpush3.msra.mxu1 %v543_v23  ;;  %1255 = vmatprep.mubr.msk.f32.mxu1 %vm1339_vm3, %v1338_v53  ;;  %v531_v23 = vsel %vm417_vm0, %v530_v19, %v430_v20 }
 0x106   :  { %1249 = vmatprep.subr.mxu1 %v1338_v53 }
 0x107   :  { %1250 = vmatpush3.msra.mxu1 %v541_v43  ;;  %v916_v44 = vpop.permute.xlu0 %915 }
 0x108   :  { %1251 = vmatprep.subr.mxu1 %v1338_v53 }
 0x109   :  { %1252 = vmatpush3.msra.mxu1 %v539_v54 }
 0x10a   :  { %1253 = vmatprep.subr.mxu1 %v1338_v53 }
 0x10b   :  { %1254 = vmatpush3.msra.mxu1 %v537_v3 }
 0x10c   :  { %1256 = vmatmul.mubr.msk.f32.vlgmr.msra.gmra.mxu1 %vm399_vm4, %v531_v23  ;;  %1269 = vmatprep.subr.mxu1 %v1338_v53 }
 0x10d   :  { %1270 = vmatpush3.msra.mxu1 %v727_v11  ;;  %1277 = vmatprep.mubr.msk.f32.mxu1 %vm1339_vm3, %v1338_v53 }
 0x10e   :  { %1271 = vmatprep.subr.mxu1 %v1338_v53 }
 0x10f   :  { %1272 = vmatpush3.msra.mxu1 %v725_v24 }
 0x110   :  { %1273 = vmatprep.subr.mxu1 %v1338_v53 }
 0x111   :  { %1274 = vmatpush3.msra.mxu1 %v723_v25 }
 0x112   :  { %1275 = vmatprep.subr.mxu1 %v1338_v53 }
 0x113   :  { %1276 = vmatpush3.msra.mxu1 %v721_v26 }
 0x1c4   :  { %v523_v27 = vpop.f32.mrf.mxu1 }
 0x1c5   :  { %v524_v28 = vadd.f32 %v1607_v2, %v523_v27  ;;  %v928_v2 = vpop.permute.xlu1 %927 }
 0x1c6   :  { %v1246_v29 = vpop.f32.mrf.mxu1 }
 0x1c7   :  { %v527_v30 = vmax.f32 %v524_v28, 0.0 }
 0x1c9   :  { %1278 = vmatmul.mubr.msk.f32.vlgmr.msra.gmra.mxu1 %vm399_vm4, %v527_v30  ;;  %v924_v39 = vpop.permute.xlu1 %923 }
 0x1cc   :  { %v620_v31 = vpop.f32.mrf.mxu1 }
 0x1cd   :  { %v621_v33 = vadd.f32 %v620_v31, %v550_v21  ;;  %v920_v41 = vpop.permute.xlu1 %919 }
 0x1ce   :  { %v1257_v34 = vpop.f32.mrf.mxu1 }
 0x1cf   :  { %v624_v35 = vmax.f32 %v621_v33, 0.0 }
 0x1d1   :  { %1267 = vmatmul.mubr.msk.f32.vlgmr.msra.gmra.mxu0 %vm399_vm4, %v624_v35  ;;  %v918_v43 = vpop.permute.xlu1 %917 }
 0x1d2   :  { %1281 = vmatpush3.msra.mxu0 %v812_v32  ;;  %1284 = vmatprep.mubr.msk.f32.mxu0 %vm1339_vm3, %v1338_v53 }
 0x1d3   :  { %1282 = vmatprep.subr.mxu0 %v1338_v53 }
 0x1d4   :  { %1283 = vmatpush3.msra.mxu0 %v810_v36 }
 0x1d5   :  { %1285 = vmatmul.mubr.msk.f32.vlgmr.msra.gmra.mxu0 %vm815_vm5, %v806_v37  ;;  %1287 = vmatprep.subr.mxu0 %v1338_v53 }
 0x1d6   :  { %1288 = vmatpush3.msra.mxu0 %v930_v1  ;;  %1303 = vmatprep.mubr.msk.f32.mxu0 %vm1339_vm3, %v1338_v53 }
 0x1d7   :  { %1289 = vmatprep.subr.mxu0 %v1338_v53 }
 0x1d8   :  { %1290 = vmatpush3.msra.mxu0 %v928_v2 }
 0x1d9   :  { %1291 = vmatprep.subr.mxu0 %v1338_v53 }
 0x1da   :  { %1292 = vmatpush3.msra.mxu0 %v926_v38 }
 0x1db   :  { %1293 = vmatprep.subr.mxu0 %v1338_v53 }
 0x1dc   :  { %1294 = vmatpush3.msra.mxu0 %v924_v39 }
 0x1dd   :  { %1295 = vmatprep.subr.mxu0 %v1338_v53 }
 0x1de   :  { %1296 = vmatpush3.msra.mxu0 %v922_v40 }
 0x1df   :  { %1297 = vmatprep.subr.mxu0 %v1338_v53 }
 0x1e0   :  { %1298 = vmatpush3.msra.mxu0 %v920_v41 }
 0x1e1   :  { %1299 = vmatprep.subr.mxu0 %v1338_v53 }
 0x1e2   :  { %1300 = vmatpush3.msra.mxu0 %v918_v43 }
 0x1e3   :  { %1301 = vmatprep.subr.mxu0 %v1338_v53 }
 0x1e4   :  { %1302 = vmatpush3.msra.mxu0 %v916_v44 }
 0x289   :  { %v801_v45 = vpop.f32.mrf.mxu1 }
 0x28b   :  { %v1279_v46 = vpop.f32.mrf.mxu1 }
 0x291   :  { %v716_v47 = vpop.f32.mrf.mxu0 }
 0x292   :  { %v802_v49 = vadd.f32 %v801_v45, %v716_v47 }
 0x293   :  { %v1268_v48 = vpop.f32.mrf.mxu0 }
 0x295   :  { %v884_v50 = vpop.f32.mrf.mxu0 }
 0x296   :  { %v888_v51 = vadd.f32 %v884_v50, %v802_v49 }
 0x297   :  { %v1286_v52 = vpop.f32.mrf.mxu0 }
 0x298   :  { %v892_v54 = vadd.f32 %v890_v42, %v888_v51 }
 0x29a   :  { %v893_v55 = vmax.f32 %v892_v54, 0.0 }
 0x29c   :  { %1304 = vmatmul.mubr.msk.f32.vlgmr.msra.gmra.mxu0 %vm939_vm6, %v893_v55 }
 0x35c   :  { %v1009_v53 = vpop.f32.mrf.mxu0 }
 0x35d   :  { %v1010_v57 = vadd.f32 %v1055_v56, %v1009_v53 }
 0x35e   :  { %v1305_v58 = vpop.f32.mrf.mxu0 }
 0x35f   :  { %1014 = vst.msk [vmem:[#allocation2] sm:$0x3] %vm1013_vm7, %v1010_v57 }
 0x360   :  { %1326 = shalt.err (!%p1323_p4)
}
 0x361   :  { %1024 = dma.vmem_to_hbm [thread:$0]  %s1022_s30, 32, %s1679_s3, [#allocation3]  }
 0x362   :  { %1335 = dma.done.wait [#allocation3], 32  }
 0x363   :  { %1336 = vsyncadd [#allocation3], 4294967264 }
 0x364   :  { %1028 = vsyncpa [#allocation3], 1 }

</bundles_post_ra>
